<compile_context>
chip_gen: v6e
topology: v6e:2x2x1
jax: 0.10.0
libtpu: 0.0.40
codegen_flags: <defaults>
</compile_context>

<pallas_src>
import jax
import jax.numpy as jnp
from jax.experimental import pallas as pl
from jax.experimental.pallas import tpu as pltpu


# ----------------------------------------------------------------------------
# Kernel: one spatial tile of the 1x1x1 conv, whole batch per block.
#   w_ref : SMEM (C_out, C_in)   scalar weights
#   b_ref : SMEM (C_out,)        scalar bias
#   x_ref : VMEM (N, C_in, TS)   input tile   (TS spatial positions on lanes)
#   o_ref : VMEM (N, C_out, TS)  output tile
# ----------------------------------------------------------------------------
def _outconv_kernel(w_ref, b_ref, x_ref, o_ref):
    n, c_in, ts = x_ref.shape
    c_out = o_ref.shape[1]

    # Load each input channel plane once; each is a lane-dense (N, TS) slab.
    xs = [x_ref[:, ci, :] for ci in range(c_in)]

    for co in range(c_out):  # statically unrolled (C_out is tiny)
        acc = jnp.full((n, ts), b_ref[co], dtype=jnp.float32)
        for ci in range(c_in):  # statically unrolled (C_in is tiny)
            acc = acc + w_ref[co, ci] * xs[ci]
        o_ref[:, co, :] = acc.astype(o_ref.dtype)


# ----------------------------------------------------------------------------
# Wrapper: OutConv forward.
#   x : (N, C_in, D, H, W)  NCDHW, like PyTorch
#   w : (C_out, C_in, 1, 1, 1)  torch Conv3d weight layout
#   b : (C_out,)
# returns (N, C_out, D, H, W)
# ----------------------------------------------------------------------------
def outconv_forward(x, w, b, *, ts_max=2048):
    N, C_in, D, H, W = x.shape
    C_out = w.shape[0]
    S = D * H * W

    wm = w.reshape(C_out, C_in).astype(jnp.float32)
    bv = b.astype(jnp.float32)

    # Pure view: no data movement, spatial axis becomes the lane axis.
    x2 = x.reshape(N, C_in, S).astype(jnp.float32)

    # Spatial tile: multiple of 128 lanes, capped so the block stays small,
    # padded so the grid divides evenly (padding is sliced off afterwards).
    ts = min(ts_max, pl.cdiv(S, 128) * 128)
    s_pad = pl.cdiv(S, ts) * ts
    if s_pad != S:
        x2 = jnp.pad(x2, ((0, 0), (0, 0), (0, s_pad - S)))

    out = pl.pallas_call(
        _outconv_kernel,
        out_shape=jax.ShapeDtypeStruct((N, C_out, s_pad), jnp.float32),
        grid=(s_pad // ts,),
        in_specs=[
            pl.BlockSpec(memory_space=pltpu.MemorySpace.SMEM),   # weights
            pl.BlockSpec(memory_space=pltpu.MemorySpace.SMEM),   # bias
            pl.BlockSpec((N, C_in, ts), lambda s: (0, 0, s)),    # input tile
        ],
        out_specs=pl.BlockSpec((N, C_out, ts), lambda s: (0, 0, s)),
        compiler_params=pltpu.CompilerParams(
            dimension_semantics=("parallel",)),
    )(wm, bv, x2)

    return out[:, :, :S].reshape(N, C_out, D, H, W)


if __name__ == "__main__":
    key = jax.random.PRNGKey(0)
    k_w, k_b, k_x = jax.random.split(key, 3)

    # Small shapes consistent with the module: batch=2, in_channels=4,
    # out_channels=2, spatial 16^3.
    N, C_in, C_out, D, H, W = 2, 4, 2, 16, 16, 16

    w = 0.1 * jax.random.normal(k_w, (C_out, C_in, 1, 1, 1), jnp.float32)
    b = 0.1 * jax.random.normal(k_b, (C_out,), jnp.float32)
    x = jax.random.normal(k_x, (N, C_in, D, H, W), jnp.float32)

    fwd = jax.jit(outconv_forward)
    out = jax.block_until_ready(fwd(x, w, b))

    # Reference: 1x1x1 conv == channel matmul + bias.
    ref = jnp.einsum("oi,nidhw->nodhw", w.reshape(C_out, C_in), x) \
        + b[None, :, None, None, None]

    assert out.shape == (N, C_out, D, H, W)
    assert bool(jnp.all(jnp.isfinite(out)))
    assert bool(jnp.allclose(out, ref, atol=1e-5, rtol=1e-5))
    print("KERNEL_OK")
</pallas_src>

<mosaic_0001>
module attributes {stable_mosaic.version = 11 : i64} {
  func.func @_outconv_kernel(%arg0: i32, %arg1: memref<2x4xf32, #tpu.memory_space<smem>>, %arg2: memref<2xf32, #tpu.memory_space<smem>>, %arg3: memref<2x4x2048xf32, #tpu.memory_space<vmem>>, %arg4: memref<2x2x2048xf32, #tpu.memory_space<vmem>>) attributes {dimension_semantics = [#tpu.dimension_semantics<parallel>], iteration_bounds = array<i64: 2>, scalar_prefetch = 0 : i64, scratch_operands = 0 : i64, tpu.core_type = #tpu.core_type<tc>, window_params = [{transform_indices = @transform_0, window_bounds = array<i64: 2, 4>}, {transform_indices = @transform_1, window_bounds = array<i64: 2>}, {transform_indices = @transform_2, window_bounds = array<i64: 2, 4, 2048>}, {transform_indices = @transform_3, window_bounds = array<i64: 2, 2, 2048>}]} {
    %c0 = arith.constant 0 : index
    %c0_0 = arith.constant 0 : index
    %c0_1 = arith.constant 0 : index
    %0 = vector.load %arg3[%c0, %c0_0, %c0_1] : memref<2x4x2048xf32, #tpu.memory_space<vmem>>, vector<2x1x2048xf32>
    %1 = vector.shape_cast %0 : vector<2x1x2048xf32> to vector<2x2048xf32>
    %c0_2 = arith.constant 0 : index
    %c1 = arith.constant 1 : index
    %c0_3 = arith.constant 0 : index
    %2 = vector.load %arg3[%c0_2, %c1, %c0_3] : memref<2x4x2048xf32, #tpu.memory_space<vmem>>, vector<2x1x2048xf32>
    %3 = vector.shape_cast %2 : vector<2x1x2048xf32> to vector<2x2048xf32>
    %c0_4 = arith.constant 0 : index
    %c2 = arith.constant 2 : index
    %c0_5 = arith.constant 0 : index
    %4 = vector.load %arg3[%c0_4, %c2, %c0_5] : memref<2x4x2048xf32, #tpu.memory_space<vmem>>, vector<2x1x2048xf32>
    %5 = vector.shape_cast %4 : vector<2x1x2048xf32> to vector<2x2048xf32>
    %c0_6 = arith.constant 0 : index
    %c3 = arith.constant 3 : index
    %c0_7 = arith.constant 0 : index
    %6 = vector.load %arg3[%c0_6, %c3, %c0_7] : memref<2x4x2048xf32, #tpu.memory_space<vmem>>, vector<2x1x2048xf32>
    %7 = vector.shape_cast %6 : vector<2x1x2048xf32> to vector<2x2048xf32>
    %c0_8 = arith.constant 0 : index
    %8 = memref.load %arg2[%c0_8] : memref<2xf32, #tpu.memory_space<smem>>
    %9 = vector.broadcast %8 : f32 to vector<2x2048xf32>
    %c0_9 = arith.constant 0 : index
    %c0_10 = arith.constant 0 : index
    %10 = memref.load %arg1[%c0_9, %c0_10] : memref<2x4xf32, #tpu.memory_space<smem>>
    %11 = vector.broadcast %10 : f32 to vector<2x2048xf32>
    %12 = arith.mulf %11, %1 : vector<2x2048xf32>
    %13 = arith.addf %9, %12 : vector<2x2048xf32>
    %c0_11 = arith.constant 0 : index
    %c1_12 = arith.constant 1 : index
    %14 = memref.load %arg1[%c0_11, %c1_12] : memref<2x4xf32, #tpu.memory_space<smem>>
    %15 = vector.broadcast %14 : f32 to vector<2x2048xf32>
    %16 = arith.mulf %15, %3 : vector<2x2048xf32>
    %17 = arith.addf %13, %16 : vector<2x2048xf32>
    %c0_13 = arith.constant 0 : index
    %c2_14 = arith.constant 2 : index
    %18 = memref.load %arg1[%c0_13, %c2_14] : memref<2x4xf32, #tpu.memory_space<smem>>
    %19 = vector.broadcast %18 : f32 to vector<2x2048xf32>
    %20 = arith.mulf %19, %5 : vector<2x2048xf32>
    %21 = arith.addf %17, %20 : vector<2x2048xf32>
    %c0_15 = arith.constant 0 : index
    %c3_16 = arith.constant 3 : index
    %22 = memref.load %arg1[%c0_15, %c3_16] : memref<2x4xf32, #tpu.memory_space<smem>>
    %23 = vector.broadcast %22 : f32 to vector<2x2048xf32>
    %24 = arith.mulf %23, %7 : vector<2x2048xf32>
    %25 = arith.addf %21, %24 : vector<2x2048xf32>
    %c0_17 = arith.constant 0 : index
    %c0_18 = arith.constant 0 : index
    %c0_19 = arith.constant 0 : index
    %26 = vector.load %arg4[%c0_17, %c0_18, %c0_19] : memref<2x2x2048xf32, #tpu.memory_space<vmem>>, vector<2x1x2048xf32>
    %27 = vector.shape_cast %26 : vector<2x1x2048xf32> to vector<2x2048xf32>
    %28 = vector.shape_cast %25 : vector<2x2048xf32> to vector<2x1x2048xf32>
    tpu.vector_store %arg4[%c0_17, %c0_18, %c0_19], %28 {strides = array<i32>} : memref<2x2x2048xf32, #tpu.memory_space<vmem>>, vector<2x1x2048xf32>,
    %c1_20 = arith.constant 1 : index
    %29 = memref.load %arg2[%c1_20] : memref<2xf32, #tpu.memory_space<smem>>
    %30 = vector.broadcast %29 : f32 to vector<2x2048xf32>
    %c1_21 = arith.constant 1 : index
    %c0_22 = arith.constant 0 : index
    %31 = memref.load %arg1[%c1_21, %c0_22] : memref<2x4xf32, #tpu.memory_space<smem>>
    %32 = vector.broadcast %31 : f32 to vector<2x2048xf32>
    %33 = arith.mulf %32, %1 : vector<2x2048xf32>
    %34 = arith.addf %30, %33 : vector<2x2048xf32>
    %c1_23 = arith.constant 1 : index
    %c1_24 = arith.constant 1 : index
    %35 = memref.load %arg1[%c1_23, %c1_24] : memref<2x4xf32, #tpu.memory_space<smem>>
    %36 = vector.broadcast %35 : f32 to vector<2x2048xf32>
    %37 = arith.mulf %36, %3 : vector<2x2048xf32>
    %38 = arith.addf %34, %37 : vector<2x2048xf32>
    %c1_25 = arith.constant 1 : index
    %c2_26 = arith.constant 2 : index
    %39 = memref.load %arg1[%c1_25, %c2_26] : memref<2x4xf32, #tpu.memory_space<smem>>
    %40 = vector.broadcast %39 : f32 to vector<2x2048xf32>
    %41 = arith.mulf %40, %5 : vector<2x2048xf32>
    %42 = arith.addf %38, %41 : vector<2x2048xf32>
    %c1_27 = arith.constant 1 : index
    %c3_28 = arith.constant 3 : index
    %43 = memref.load %arg1[%c1_27, %c3_28] : memref<2x4xf32, #tpu.memory_space<smem>>
    %44 = vector.broadcast %43 : f32 to vector<2x2048xf32>
    %45 = arith.mulf %44, %7 : vector<2x2048xf32>
    %46 = arith.addf %42, %45 : vector<2x2048xf32>
    %c0_29 = arith.constant 0 : index
    %c1_30 = arith.constant 1 : index
    %c0_31 = arith.constant 0 : index
    %47 = vector.load %arg4[%c0_29, %c1_30, %c0_31] : memref<2x2x2048xf32, #tpu.memory_space<vmem>>, vector<2x1x2048xf32>
    %48 = vector.shape_cast %47 : vector<2x1x2048xf32> to vector<2x2048xf32>
    %49 = vector.shape_cast %46 : vector<2x2048xf32> to vector<2x1x2048xf32>
    tpu.vector_store %arg4[%c0_29, %c1_30, %c0_31], %49 {strides = array<i32>} : memref<2x2x2048xf32, #tpu.memory_space<vmem>>, vector<2x1x2048xf32>,
    return
  }
  func.func @transform_0(%arg0: i32) -> (i32, i32) {
    %c0_i32 = arith.constant 0 : i32
    %c0_i32_0 = arith.constant 0 : i32
    %c0_i32_1 = arith.constant 0 : i32
    return %c0_i32, %c0_i32_0 : i32, i32
  }
  func.func @transform_1(%arg0: i32) -> i32 {
    %c0_i32 = arith.constant 0 : i32
    %c0_i32_0 = arith.constant 0 : i32
    return %c0_i32 : i32
  }
  func.func @transform_2(%arg0: i32) -> (i32, i32, i32) {
    %c0_i32 = arith.constant 0 : i32
    %c0_i32_0 = arith.constant 0 : i32
    %c0_i32_1 = arith.constant 0 : i32
    return %c0_i32, %c0_i32_0, %arg0 : i32, i32, i32
  }
  func.func @transform_3(%arg0: i32) -> (i32, i32, i32) {
    %c0_i32 = arith.constant 0 : i32
    %c0_i32_0 = arith.constant 0 : i32
    %c0_i32_1 = arith.constant 0 : i32
    return %c0_i32, %c0_i32_0, %arg0 : i32, i32, i32
  }
}

</mosaic_0001>

<bundles_post_ra>
// kernel: outconv_forward.1
= control target key start
LH: loop header
LB: loop body
LE: loop exit
PB: predicated region body
PF: predicated region fallthrough
CT: control target
= control target key end

     0   :  { %8 = vsyncpa [#allocation3], 0  ;;  %s875_s0 = inlined_call_operand.vmem [shape: f32[2,4], index: 0, kind: input, shape index: {}]   ;;  %s876_s1 = inlined_call_operand.vmem [shape: f32[2], index: 1, kind: input, shape index: {}]   ;;  %s877_s2 = inlined_call_operand.vmem [shape: f32[2,4,4096], index: 2, kind: input, shape index: {}]   ;;  %s878_s3 = inlined_call_operand.vmem [shape: f32[2,2,4096], index: 3, kind: output, shape index: {}]  }
   0x1   :  { %9 = vsyncpa [#allocation5], 0  ;;  %s673_s12 = smov 0   ;;  %s675_s13 = smov 0  }
   0x2   :  { %s677_s14 = smov 0  }
   0x3 LB: > { %s689_s15 = sadd.s32 4294967295, %s649_s14   ;;  %s692_s16 = sadd.s32 1, %s649_s14   ;;  %s649_s14 = sphi %s677_s14, %s894_s14   ;;  %s645_s13 = sphi %s675_s13, %s893_s13   ;;  %s641_s12 = sphi %s673_s12, %s892_s12  }
   0x4   : > { %s61_s17 = ssub.s32 %s649_s14, %s692_s16  ;;  %s64_s18 = sadd.s32 1, %s645_s13 }
   0x5   : > { %p62_p0 = scmp.eq.s32.totalorder %s61_s17, 0  ;;  %p71_p1 = scmp.ne.s32.totalorder %s645_s13, %s641_s12 }
   0x6   : > { %p72_p2 = scmp.eq.s32.totalorder %s649_s14, 0  ;;  %p101_p3 = scmp.eq.s32.totalorder %s689_s15, 1 }
   0x7   : > { %s702_s19 = scalar_select %p62_p0, %s645_s13, %s64_s18  }
   0x8   : > { %p704_p4 = por %p72_p2, %p71_p1  ;;  %p708_p5 = por %p101_p3, %p71_p1 }
   0x9   : > { %p495_p6 = scmp.ge.s32.totalorder %s649_s14, 1  ;;  %p114_p7 = scmp.lt.s32.totalorder %s649_s14, 3 }
   0xa   : > { %s881_s20 = scalar_select %p704_p4, 1, 0 }
   0xb   : > { %s882_s21 = scalar_select %p708_p5, 1, 0 }
   0xc   : > { %p879_p8 = scmp.eq.s32.totalorder %s689_s15, 0  ;;  %p715_p9 = pnand %p495_p6, %p114_p7 }
   0xd   : > { %s127_s25 = sshll.u32 %s875_s0, 4  ;;  %s138_s28 = sshll.u32 %s876_s1, 4  ;;  %s128_s25 = int_to_ptr.vmem [resolvable:$true] %s127_s25  ;;  %s139_s28 = int_to_ptr.vmem [resolvable:$true] %s138_s28 }
   0xe   : > { %s883_s22 = scalar_select %p715_p9, 1, 0 }
   0xf   : > { %p552_p10 = pneg %p715_p9  ;;  %s589_s30 = scalar_lea.vmem %s128_s25, 32 }
  0x10   : > { %p590_p12 = scmp.ne.s32.totalorder %s128_s25, %s589_s30  ;;  %p597_p2 = scmp.lt.s32.totalorder %s128_s25, %s128_s25 }
  0x11   : > { %p729_p11 = pnand %p879_p8, %p552_p10  ;;  %p598_p3 = scmp.lt.s32.totalorder %s589_s30, %s589_s30 }
  0x13   : > { %p591_p13 = pneg %p729_p11  ;;  %p599_p6 = por %p598_p3, %p597_p2 }
  0x15   : > { %p592_p0 = pnand %p591_p13, %p590_p12 }
  0x17   : > { %p593_p1 = pneg %p592_p0 }
  0x19   : > { %p600_p7 = pnand %p599_p6, %p593_p1 }
  0x1b   : > { %603 = shalt.err (!%p600_p7)
}
  0x1c   : > { %s651_s4 = smov [#allocation2]   ;;  %s604_s5 = scalar_lea.vmem %s139_s28, 16 }
  0x1d   : > { %555 = dma.vmem_to_smem (!%p729_p11), %s128_s25, 32, %s651_s4, [#allocation3]  }
  0x1e   : > { %p605_p10 = scmp.ne.s32.totalorder %s139_s28, %s604_s5  ;;  %p612_p9 = scmp.lt.s32.totalorder %s139_s28, %s139_s28 }
  0x1f   : > { %p613_p4 = scmp.lt.s32.totalorder %s604_s5, %s604_s5 }
  0x20   : > { %p607_p8 = pnand %p605_p10, %p591_p13 }
  0x21   : > { %p614_p12 = por %p613_p4, %p612_p9 }
  0x22   : > { %p608_p5 = pneg %p607_p8 }
  0x24   : > { %p615_p0 = pnand %p614_p12, %p608_p5 }
  0x26   : > { %618 = shalt.err (!%p615_p0)
}
  0x27   : > { %s652_s6 = smov [#allocation4]   ;;  %p498_p1 = scmp.ge.s32.totalorder %s649_s14, 2 }
  0x28   : > { %558 = dma.vmem_to_smem (!%p729_p11), %s139_s28, 16, %s652_s6, [#allocation5]  }
  0x29   : > { %145 = sbr.rel (%p498_p1) target bundleno = 58 (0x3a), region = 24  ;;  %p885_p2 = scmp.ne.s32.totalorder (!%p498_p1), %s881_s20, 0 }
  0x2e   : > { %148 = sbr.rel (!%p885_p2) target bundleno = 58 (0x3a), region = 28  ;;  %s150_s7 = sand.u32 (%p885_p2), 1, %s645_s13  }
  0x2f   : > { %s542_s8 = sshll.u32 (%p885_p2), %s649_s14, 6  ;;  %s499_s9 = sshll.u32 (%p885_p2), %s150_s7, 7 }
  0x30   : > { %s747_s17 = scalar_lea.vmem (%p885_p2), %s877_s2, %s542_s8  ;;  %s152_s18 = scalar_lea.vmem (%p885_p2), [#allocation6], %s499_s9 }
  0x31   : > { %v168_v0 = vld [vmem:[%s747_s17] sm:$0xff] (%p885_p2)  ;;  %v170_v1 = vld [vmem:[%s747_s17 + $0x8] sm:$0xff] (%p885_p2)  ;;  %v172_v2 = vld [vmem:[%s747_s17 + $0x10] sm:$0xff] (%p885_p2) }
  0x32   : > { %169 = vst [vmem:[%s152_s18] sm:$0xff] (%p885_p2), %v168_v0  ;;  %171 = vst [vmem:[%s152_s18 + $0x8] sm:$0xff] (%p885_p2), %v170_v1  ;;  %v174_v3 = vld [vmem:[%s747_s17 + $0x18] sm:$0xff] (%p885_p2)  ;;  %v176_v4 = vld [vmem:[%s747_s17 + $0x20] sm:$0xff] (%p885_p2) }
  0x33   : > { %173 = vst [vmem:[%s152_s18 + $0x10] sm:$0xff] %v172_v2  ;;  %v178_v5 = vld [vmem:[%s747_s17 + $0x28] sm:$0xff]  ;;  %175 = vst [vmem:[%s152_s18 + $0x18] sm:$0xff] %v174_v3  ;;  %v180_v6 = vld [vmem:[%s747_s17 + $0x30] sm:$0xff] }
  0x34   : > { %177 = vst [vmem:[%s152_s18 + $0x20] sm:$0xff] %v176_v4  ;;  %179 = vst [vmem:[%s152_s18 + $0x28] sm:$0xff] %v178_v5  ;;  %v182_v7 = vld [vmem:[%s747_s17 + $0x38] sm:$0xff]  ;;  %v184_v8 = vld [vmem:[%s747_s17 + $0x80] sm:$0xff] }
  0x35   : > { %181 = vst [vmem:[%s152_s18 + $0x30] sm:$0xff] %v180_v6  ;;  %183 = vst [vmem:[%s152_s18 + $0x38] sm:$0xff] %v182_v7  ;;  %v186_v9 = vld [vmem:[%s747_s17 + $0x88] sm:$0xff]  ;;  %v188_v10 = vld [vmem:[%s747_s17 + $0x90] sm:$0xff] }
  0x36   : > { %185 = vst [vmem:[%s152_s18 + $0x40] sm:$0xff] %v184_v8  ;;  %v190_v11 = vld [vmem:[%s747_s17 + $0x98] sm:$0xff]  ;;  %187 = vst [vmem:[%s152_s18 + $0x48] sm:$0xff] %v186_v9  ;;  %v192_v12 = vld [vmem:[%s747_s17 + $0xa0] sm:$0xff] }
  0x37   : > { %189 = vst [vmem:[%s152_s18 + $0x50] sm:$0xff] %v188_v10  ;;  %191 = vst [vmem:[%s152_s18 + $0x58] sm:$0xff] %v190_v11  ;;  %v194_v13 = vld [vmem:[%s747_s17 + $0xa8] sm:$0xff]  ;;  %v196_v14 = vld [vmem:[%s747_s17 + $0xb0] sm:$0xff] }
  0x38   : > { %193 = vst [vmem:[%s152_s18 + $0x60] sm:$0xff] %v192_v12  ;;  %195 = vst [vmem:[%s152_s18 + $0x68] sm:$0xff] %v194_v13  ;;  %v198_v15 = vld [vmem:[%s747_s17 + $0xb8] sm:$0xff] }
  0x39   : > { %197 = vst [vmem:[%s152_s18 + $0x70] sm:$0xff] %v196_v14  ;;  %199 = vst [vmem:[%s152_s18 + $0x78] sm:$0xff] %v198_v15 }
  0x3a PF: > { %p886_p4 = scmp.ne.s32.totalorder %s883_s22, 0 }
  0x3b   : > { %p887_p5 = scmp.eq.s32.totalorder (!%p886_p4), %s689_s15, 0 }
  0x3c   : > { %208 = sbr.rel (%p886_p4) target bundleno = 113 (0x71), region = 51 }
  0x41   : > { %632 = dma.done.wait (%p887_p5), [#allocation3], 32   ;;  %p888_p8 = pmov %p887_p5 }
  0x42   : > { %p889_p9 = pmov %p887_p5 }
  0x43   : > { %634 = vsyncadd (%p888_p8), [#allocation3], 4294967264 }
  0x44   : > { %636 = dma.done.wait (%p889_p9), [#allocation5], 16   ;;  %p890_p11 = pmov %p887_p5 }
  0x45   : > { %s219_s14 = sand.u32 1, %s641_s12  }
  0x46   : > { %638 = vsyncadd (%p890_p11), [#allocation5], 4294967280  ;;  %s505_s20 = sshll.u32 %s219_s14, 7 }
  0x47   : > { %s778_s23 = scalar_lea.vmem [#allocation6], %s505_s20 }
  0x48   : > { %225 = sfence }
  0x49   : > { %s275_s22 = sld [smem:[#allocation4]]  ;;  %v244_v16 = vld [vmem:[%s778_s23] ss:$4 sm:$0xff]  ;;  %v510_v17 = vld [vmem:[%s778_s23 + $0x1] ss:$4 sm:$0xff]  ;;  %s506_s6 = sshll.u32 %s219_s14, 6 }
  0x4a   : > { %s277_s24 = sld [smem:[#allocation2]]  ;;  %v783_v18 = vld [vmem:[%s778_s23 + $0x20] ss:$4 sm:$0xff]  ;;  %v791_v20 = vld [vmem:[%s778_s23 + $0x21] ss:$4 sm:$0xff]  ;;  %s834_s12 = scalar_lea.vmem [#allocation7], %s506_s6 }
  0x4b   : > { %s522_s25 = sld [smem:[#allocation2 + $0x1]]  ;;  %v786_v19 = vld [vmem:[%s778_s23 + $0x40] ss:$4 sm:$0xff]  ;;  %v794_v21 = vld [vmem:[%s778_s23 + $0x41] ss:$4 sm:$0xff]  ;;  %p891_p13 = scmp.ne.s32.totalorder %s882_s21, 0 }
  0x4c   : > { %s523_s26 = sld [smem:[#allocation2 + $0x2]]  ;;  %v514_v22 = vld [vmem:[%s778_s23 + $0x2] ss:$4 sm:$0xff]  ;;  %v800_v23 = vld [vmem:[%s778_s23 + $0x3] ss:$4 sm:$0xff]  ;;  %s543_s7 = sshll.u32 (%p891_p13), %s689_s15, 5 }
  0x4d   : > { %s524_s27 = sld [smem:[#allocation2 + $0x3]]  ;;  %v515_v28 = vld [vmem:[%s778_s23 + $0x22] ss:$4 sm:$0xff]  ;;  %v806_v29 = vld [vmem:[%s778_s23 + $0x23] ss:$4 sm:$0xff]  ;;  %s383_s10 = scalar_lea.vmem (%p891_p13), %s878_s3, %s543_s7 }
  0x4e   : > { %s788_s28 = sld [smem:[#allocation4 + $0x1]]  ;;  %v516_v35 = vld [vmem:[%s778_s23 + $0x42] ss:$4 sm:$0xff]  ;;  %v815_v36 = vld [vmem:[%s778_s23 + $0x43] ss:$4 sm:$0xff] }
  0x4f   : > { %s796_s29 = sld [smem:[#allocation2 + $0x80]]  ;;  %v276_v24 = vstv %s275_s22  ;;  %v509_v42 = vld [vmem:[%s778_s23 + $0x60] ss:$4 sm:$0xff]  ;;  %v513_v43 = vld [vmem:[%s778_s23 + $0x61] ss:$4 sm:$0xff] }
  0x50   : > { %v278_v25 = vstv %s277_s24  ;;  %s802_s30 = sld [smem:[#allocation2 + $0x81]]  ;;  %v517_v44 = vld [vmem:[%s778_s23 + $0x62] ss:$4 sm:$0xff]  ;;  %v521_v49 = vld [vmem:[%s778_s23 + $0x63] ss:$4 sm:$0xff] }
  0x51   : > { %v279_v26 = vmul.f32 %v278_v25, %v244_v16  ;;  %v288_v27 = vstv %s522_s25  ;;  %v280_v30 = vmul.f32 %v783_v18, %v278_v25  ;;  %v281_v31 = vmul.f32 %v786_v19, %v278_v25  ;;  %s810_s4 = sld [smem:[#allocation2 + $0x82]] }
  0x52   : > { %v289_v32 = vmul.f32 %v510_v17, %v288_v27  ;;  %v298_v33 = vstv %s523_s26  ;;  %v290_v34 = vmul.f32 %v791_v20, %v288_v27  ;;  %v291_v37 = vmul.f32 %v794_v21, %v288_v27  ;;  %s818_s5 = sld [smem:[#allocation2 + $0x83]] }
  0x53   : > { %v283_v38 = vadd.f32 %v279_v26, %v276_v24  ;;  %v299_v39 = vmul.f32 %v514_v22, %v298_v33  ;;  %v308_v40 = vstv %s524_s27  ;;  %v284_v41 = vadd.f32 %v280_v30, %v276_v24 }
  0x54   : > { %v309_v45 = vmul.f32 %v800_v23, %v308_v40  ;;  %v300_v46 = vmul.f32 %v515_v28, %v298_v33  ;;  %v310_v47 = vmul.f32 %v806_v29, %v308_v40  ;;  %v285_v48 = vadd.f32 %v281_v31, %v276_v24 }
  0x55   : > { %v293_v50 = vadd.f32 %v289_v32, %v283_v38  ;;  %v294_v51 = vadd.f32 %v290_v34, %v284_v41  ;;  %v301_v52 = vmul.f32 %v516_v35, %v298_v33  ;;  %v311_v53 = vmul.f32 %v815_v36, %v308_v40 }
  0x56   : > { %v295_v54 = vadd.f32 %v291_v37, %v285_v48  ;;  %v282_v55 = vmul.f32 %v509_v42, %v278_v25  ;;  %v292_v56 = vmul.f32 %v513_v43, %v288_v27  ;;  %v302_v57 = vmul.f32 %v517_v44, %v298_v33 }
  0x57   : > { %v303_v58 = vadd.f32 %v299_v39, %v293_v50  ;;  %v304_v59 = vadd.f32 %v300_v46, %v294_v51  ;;  %v312_v60 = vmul.f32 %v521_v49, %v308_v40  ;;  %v325_v61 = vstv %s788_s28 }
  0x58   : > { %v305_v62 = vadd.f32 %v301_v52, %v295_v54  ;;  %v286_v63 = vadd.f32 %v282_v55, %v276_v24  ;;  %v327_v0 = vstv %s796_s29  ;;  %v337_v1 = vstv %s802_s30 }
  0x59   : > { %v313_v2 = vadd.f32 %v309_v45, %v303_v58  ;;  %v314_v3 = vadd.f32 %v310_v47, %v304_v59  ;;  %v328_v4 = vmul.f32 %v327_v0, %v244_v16  ;;  %v338_v5 = vmul.f32 %v510_v17, %v337_v1 }
  0x5a   : > { %v315_v6 = vadd.f32 %v311_v53, %v305_v62  ;;  %v296_v7 = vadd.f32 %v292_v56, %v286_v63  ;;  %v347_v8 = vstv %s810_s4  ;;  %v357_v9 = vstv %s818_s5 }
  0x5b   : > { %317 = vst [vmem:[%s834_s12] ss:$2 sm:$0xff] %v313_v2  ;;  %525 = vst [vmem:[%s834_s12 + $0x10] ss:$2 sm:$0xff] %v314_v3  ;;  %v332_v10 = vadd.f32 %v328_v4, %v325_v61  ;;  %v348_v11 = vmul.f32 %v514_v22, %v347_v8  ;;  %v329_v12 = vmul.f32 %v783_v18, %v327_v0 }
  0x5c   : > { %526 = vst [vmem:[%s834_s12 + $0x20] ss:$2 sm:$0xff] %v315_v6  ;;  %v306_v13 = vadd.f32 %v302_v57, %v296_v7  ;;  %v358_v14 = vmul.f32 %v800_v23, %v357_v9  ;;  %v339_v15 = vmul.f32 %v791_v20, %v337_v1  ;;  %v349_v16 = vmul.f32 %v515_v28, %v347_v8 }
  0x5d   : > { %v342_v17 = vadd.f32 %v338_v5, %v332_v10  ;;  %v333_v24 = vadd.f32 %v329_v12, %v325_v61  ;;  %v330_v25 = vmul.f32 %v786_v19, %v327_v0  ;;  %v340_v26 = vmul.f32 %v794_v21, %v337_v1 }
  0x5e   : > { %v316_v27 = vadd.f32 %v312_v60, %v306_v13  ;;  %v359_v30 = vmul.f32 %v806_v29, %v357_v9  ;;  %v350_v22 = vmul.f32 %v516_v35, %v347_v8  ;;  %v331_v18 = vmul.f32 %v509_v42, %v327_v0 }
  0x5f   : > { %v352_v31 = vadd.f32 %v348_v11, %v342_v17  ;;  %v343_v32 = vadd.f32 %v339_v15, %v333_v24  ;;  %v334_v33 = vadd.f32 %v330_v25, %v325_v61  ;;  %v341_v23 = vmul.f32 %v513_v43, %v337_v1 }
  0x60   : > { %527 = vst [vmem:[%s834_s12 + $0x30] ss:$2 sm:$0xff] %v316_v27  ;;  %v335_v20 = vadd.f32 %v331_v18, %v325_v61  ;;  %v351_v28 = vmul.f32 %v517_v44, %v347_v8  ;;  %v360_v21 = vmul.f32 %v815_v36, %v357_v9  ;;  %v361_v29 = vmul.f32 %v521_v49, %v357_v9 }
  0x61   : > { %v362_v34 = vadd.f32 %v358_v14, %v352_v31  ;;  %v353_v19 = vadd.f32 %v349_v16, %v343_v32  ;;  %v344_v37 = vadd.f32 %v340_v26, %v334_v33 }
  0x62   : > { %v345_v38 = vadd.f32 %v341_v23, %v335_v20 }
  0x63   : > { %533 = vst [vmem:[%s834_s12 + $0x1] ss:$2 sm:$0xff] %v362_v34  ;;  %v363_v35 = vadd.f32 %v359_v30, %v353_v19  ;;  %v354_v39 = vadd.f32 %v350_v22, %v344_v37 }
  0x64   : > { %v355_v40 = vadd.f32 %v351_v28, %v345_v38  ;;  %380 = sbr.rel (!%p891_p13) target bundleno = 113 (0x71), region = 67 }
  0x65   : > { %534 = vst [vmem:[%s834_s12 + $0x11] ss:$2 sm:$0xff] %v363_v35  ;;  %v364_v41 = vadd.f32 %v360_v21, %v354_v39 }
  0x66   : > { %v365_v42 = vadd.f32 %v361_v29, %v355_v40 }
  0x67   : > { %535 = vst [vmem:[%s834_s12 + $0x21] ss:$2 sm:$0xff] %v364_v41 }
  0x68   : > { %536 = vst [vmem:[%s834_s12 + $0x31] ss:$2 sm:$0xff] %v365_v42 }
  0x6a   : > { %v396_v36 = vld [vmem:[%s834_s12] sm:$0xff]  ;;  %v398_v43 = vld [vmem:[%s834_s12 + $0x8] sm:$0xff] }
  0x6b   : > { %397 = vst [vmem:[%s383_s10] sm:$0xff] %v396_v36  ;;  %399 = vst [vmem:[%s383_s10 + $0x8] sm:$0xff] %v398_v43 }
  0x6c   : > { %v400_v44 = vld [vmem:[%s834_s12 + $0x10] sm:$0xff]  ;;  %v402_v45 = vld [vmem:[%s834_s12 + $0x18] sm:$0xff] }
  0x6d   : > { %401 = vst [vmem:[%s383_s10 + $0x10] sm:$0xff] %v400_v44  ;;  %403 = vst [vmem:[%s383_s10 + $0x18] sm:$0xff] %v402_v45 }
  0x6e   : > { %v404_v46 = vld [vmem:[%s834_s12 + $0x20] sm:$0xff]  ;;  %v406_v47 = vld [vmem:[%s834_s12 + $0x28] sm:$0xff] }
  0x6f   : > { %405 = vst [vmem:[%s383_s10 + $0x40] sm:$0xff] %v404_v46  ;;  %407 = vst [vmem:[%s383_s10 + $0x48] sm:$0xff] %v406_v47  ;;  %v408_v48 = vld [vmem:[%s834_s12 + $0x30] sm:$0xff]  ;;  %v410_v49 = vld [vmem:[%s834_s12 + $0x38] sm:$0xff] }
  0x70   : > { %409 = vst [vmem:[%s383_s10 + $0x50] sm:$0xff] %v408_v48  ;;  %411 = vst [vmem:[%s383_s10 + $0x58] sm:$0xff] %v410_v49 }
  0x71 PF: > { %p12_p3 = scmp.ge.s32.totalorder %s692_s16, 4   ;;  %s892_s12 = smov %s645_s13 }
  0x72   : > { %s893_s13 = smov %s702_s19  ;;  %s894_s14 = smov %s692_s16 }
  0x73   :  { %14 = sbr.rel (!%p12_p3) target bundleno = 3 (0x3), region = 144 }
  0x78   :  { %427 = vsyncpa [#allocation3], 1 }
  0x79   :  { %429 = vsyncpa [#allocation3 + $0x1], 1 }
  0x7a   :  { %430 = vsyncpa [#allocation5], 1 }

</bundles_post_ra>
